<compile_context>
chip_gen: v6e
topology: v6e:2x2x1
jax: 0.10.0
libtpu: 0.0.40
codegen_flags: <defaults>
</compile_context>

<pallas_src>
import numpy as np
import jax
import jax.numpy as jnp
from jax.experimental import pallas as pl
from jax.experimental.pallas import tpu as pltpu


# ----------------------------------------------------------------------------
# Synthetic ISP / args (the torch module only uses these via duck typing)
# ----------------------------------------------------------------------------
class SimpleISP:
    """Deterministic synthetic ISP description (4 params)."""

    def __init__(self):
        self.params_name_list = ["gamma", "contrast", "saturation", "sharpness"]
        # name -> (lower, upper, default)
        self.params_range_dict = {
            "gamma":      (0.5, 3.0, 1.0),
            "contrast":   (0.0, 2.0, 1.0),
            "saturation": (0.0, 2.0, 1.2),
            "sharpness":  (0.0, 1.0, 0.5),
        }
        self.params_constraint_dict = {
            "gamma": "Indp", "contrast": "Indp",
            "saturation": "Indp", "sharpness": "Indp",
        }
        self.params_type_list = [float, float, float, float]
        self.params_default_list = [
            self.params_range_dict[n][2] for n in self.params_name_list
        ]

    def get_params_num(self):
        return len(self.params_name_list)

    def _normalize(self, v, lo, hi, out_lo, out_hi):
        return (v - lo) / (hi - lo) * (out_hi - out_lo) + out_lo

    def _denormalize(self, v, lo, hi, in_lo, in_hi):
        return (v - in_lo) / (in_hi - in_lo) * (hi - lo) + lo

    def get_normed_list(self, params_list):
        out = []
        for name, v in zip(self.params_name_list, params_list):
            lo, hi, _ = self.params_range_dict[name]
            out.append(self._normalize(v, lo, hi, 0.0, 1.0))
        return out

    def get_denormed_list(self, normed_list):
        out = []
        for name, v in zip(self.params_name_list, normed_list):
            lo, hi, _ = self.params_range_dict[name]
            out.append(self._denormalize(v, lo, hi, 0.0, 1.0))
        return out


class Args:
    crop_size = 16
    step_flag = 1


# ----------------------------------------------------------------------------
# Per-generation budgets & tiling helpers
# ----------------------------------------------------------------------------
_PALLAS_MIN_BYTES = 1 << 20  # below this, pallas_call dispatch overhead dominates


def _tpu_budgets():
    """(per-block byte target, vmem_limit_bytes or None) per TPU generation."""
    kind = ""
    try:
        kind = jax.devices()[0].device_kind.lower()
    except Exception:
        pass
    if "v2" in kind or "v3" in kind:
        return (1 << 20, None)          # small VMEM: stay under default scoped limit
    if "v5" in kind:                    # v5e: 16 MiB default scoped / 128 MiB physical
        return (2 << 20, 32 << 20)
    if "7" in kind:                     # v7x: 64 MiB per-TC physical, 32 MiB scoped
        return (8 << 20, 32 << 20)
    return (8 << 20, 64 << 20)          # v6e / unknown: 128 MiB physical


def _compiler_params(dimension_semantics, vmem_limit):
    kwargs = dict(dimension_semantics=dimension_semantics)
    if vmem_limit is not None:
        kwargs["vmem_limit_bytes"] = vmem_limit
    return pltpu.CompilerParams(**kwargs)


def _pick_row_block(h, w, target_bytes):
    """Largest row-tile height (multiple of 8, dividing h) with th*w*4 <= target."""
    assert h % 8 == 0
    max_groups = max(1, target_bytes // (8 * w * 4))
    k = h // 8
    best, d = 1, 1
    while d * d <= k:
        if k % d == 0:
            for cand in (d, k // d):
                if cand <= max_groups and cand > best:
                    best = cand
        d += 1
    return best * 8


def _pick_lane_block(n, rows, target_bytes):
    """Largest lane-tile width dividing n (multiple of 128) whose VMEM block —
    including sublane padding of the row dim to a multiple of 8 — fits target."""
    if n % 128 != 0:
        return n                        # no legal lane split: single full block
    rows_eff = -(-rows // 8) * 8        # VMEM pads the sublane dim to mult. of 8
    max_chunks = max(1, target_bytes // (rows_eff * 128 * 4))
    k = n // 128
    best, d = 1, 1
    while d * d <= k:
        if k % d == 0:
            for cand in (d, k // d):
                if cand <= max_chunks and cand > best:
                    best = cand
        d += 1
    return best * 128


# ----------------------------------------------------------------------------
# Pallas kernels
# ----------------------------------------------------------------------------
def _build_layer_kernel(params_ref, out_ref):
    """Pure broadcast store of one pre-clamped channel value.

    params_ref: SMEM (P,) f32  (pre-clamped in the wrapper)
    out_ref:    VMEM (th, W) f32 — sublane-dense row tile of channel c
    """
    c = pl.program_id(0)
    v = params_ref[c]
    out_ref[...] = jnp.full(out_ref.shape, v, dtype=out_ref.dtype)


def _pallas_build_params_layer(clamped, img_size):
    """Fill the (1, P, H, W) params layer as a sublane/lane-dense (P*H, W) slab."""
    p = int(clamped.shape[0])
    h = w = img_size
    target, vmem_limit = _tpu_budgets()
    th = _pick_row_block(h, w, target)       # multiple of 8, divides h
    nbh = h // th

    out = pl.pallas_call(
        _build_layer_kernel,
        out_shape=jax.ShapeDtypeStruct((p * h, w), jnp.float32),
        grid=(p, nbh),
        in_specs=[pl.BlockSpec(memory_space=pltpu.MemorySpace.SMEM)],
        out_specs=pl.BlockSpec((th, w), lambda c, i: (c * nbh + i, 0)),
        compiler_params=_compiler_params(("parallel", "parallel"), vmem_limit),
    )(clamped)
    return out.reshape(1, p, h, w)


def build_params_layer(normed_params: jax.Array, img_size: int,
                       *, force_pallas: bool = False) -> jax.Array:
    """torch: expand each param to (1,1,H,W), cat on channel, clamp to [0,1]."""
    p = int(normed_params.shape[0])
    clamped = jnp.clip(normed_params.astype(jnp.float32), 0.0, 1.0)
    layer_bytes = p * img_size * img_size * 4
    # Tiny layers (the module's real size: P=4, 16x16 = 4 KiB) or heights that
    # cannot tile sublane-dense go through plain XLA — a pallas_call's dispatch
    # and per-step overhead would dominate wall-clock at these sizes.
    if (img_size % 8 != 0) or (not force_pallas and layer_bytes < _PALLAS_MIN_BYTES):
        return jnp.broadcast_to(clamped[None, :, None, None],
                                (1, p, img_size, img_size))
    return _pallas_build_params_layer(clamped, img_size)


def _make_channel_mean_kernel(inv_n: float, lane_partial: bool):
    """Tiled per-channel mean.

    lane_partial=True : accumulate per-lane partial sums (static 128-lane chunk
                        adds, pure VPU), single cross-lane reduce in finalize.
    lane_partial=False: accumulate full row-sums broadcast to all 128 lanes
                        (wide blocks; Mosaic emits the vreg add-tree itself).
    Output block is 128 lanes wide so every store is unmasked / full width.
    """

    def kernel(x_ref, out_ref):
        k = pl.program_id(0)

        @pl.when(k == 0)
        def _():
            out_ref[...] = jnp.zeros_like(out_ref)

        bw = x_ref.shape[-1]
        if lane_partial:
            partial = x_ref[:, 0:128].astype(jnp.float32)
            for j in range(1, bw // 128):
                partial = partial + x_ref[:, j * 128:(j + 1) * 128].astype(jnp.float32)
            out_ref[...] += partial
        else:
            s = jnp.sum(x_ref[...].astype(jnp.float32), axis=-1, keepdims=True)
            out_ref[...] += jnp.broadcast_to(s, out_ref.shape)

        @pl.when(k == pl.num_programs(0) - 1)
        def _():
            if lane_partial:
                total = jnp.sum(out_ref[...], axis=-1, keepdims=True) * inv_n
            else:
                total = out_ref[...] * inv_n
            out_ref[...] = jnp.broadcast_to(total, out_ref.shape)

    return kernel


def channel_means(params_layer_nchw: jax.Array) -> jax.Array:
    """Pallas equivalent of get_params_list (mean over H, W per channel).

    Fallback path for layers not produced by the builder; tiles H*W along a
    reduction grid axis so it scales to large img_size without blowing VMEM.
    Cast to f32 happens inside the kernel (no wrapper-side HBM copy).
    """
    _, p, h, w = params_layer_nchw.shape
    n = h * w
    x = params_layer_nchw.reshape(p, n)      # contiguous collapse: free in XLA
    target, vmem_limit = _tpu_budgets()
    bw = _pick_lane_block(n, p, target)
    lane_partial = (bw % 128 == 0) and (128 <= bw <= 32 * 128)

    out = pl.pallas_call(
        _make_channel_mean_kernel(1.0 / float(n), lane_partial),
        out_shape=jax.ShapeDtypeStruct((p, 128), jnp.float32),
        grid=(n // bw,),
        in_specs=[pl.BlockSpec((p, bw), lambda k: (0, k))],
        out_specs=pl.BlockSpec((p, 128), lambda k: (0, 0)),
        compiler_params=_compiler_params(("arbitrary",), vmem_limit),
    )(x)
    return out[:, 0]


# ----------------------------------------------------------------------------
# ParamsLayer module (JAX port)
# ----------------------------------------------------------------------------
class ParamsLayer:
    def __init__(self, args, isp):
        self.args = args
        self.isp = isp
        self.img_size = args.crop_size
        self.step_flag = args.step_flag
        self._params_layer = None    # (1, P, H, W) f32, NCHW like the torch module
        self._means_dev = None       # cached per-channel means (device, (P,))
        # TODO(synk): requires_grad toggling (step_flag == 3) has no Pallas/JAX
        # buffer-level equivalent; differentiate through build_params_layer instead.

    # --- params_layer property: external assignment invalidates the means cache
    @property
    def params_layer(self):
        return self._params_layer

    @params_layer.setter
    def params_layer(self, value):
        self._params_layer = value
        self._means_dev = None

    def set_params_layer(self, params_list=None):
        if params_list is None:
            params_list = self.isp.params_default_list
        params_len = len(params_list)
        assert params_len == self.isp.get_params_num(), \
            "params_list must have the same length as params_name_list"
        normed_list = self.isp.get_normed_list(params_list)
        normed = jnp.asarray(np.asarray(normed_list, dtype=np.float32))
        self._params_layer = build_params_layer(normed, self.img_size)
        # Mean of a constant plane == the clamped constant; cache on device so
        # get_params_list needs no HBM read-back of the full layer.
        self._means_dev = jnp.clip(normed, 0.0, 1.0)

    def forward(self, input):
        # Matches the torch module: forward is a no-op.
        return None

    def __call__(self, input):
        return self.forward(input)

    def get_params_list(self):
        if self._means_dev is not None:
            means = self._means_dev
        else:
            # Layer was set externally: fall back to the tiled Pallas reduction.
            means = channel_means(self._params_layer)
        return [float(m) for m in np.asarray(jax.device_get(means))]

    def update_params_layer(self):
        # Scalar constraint logic stays in Python (glue); the broadcast+clamp
        # rebuild of the layer reuses the fill path (XLA bypass when tiny,
        # Pallas when large).
        normed_list = self.get_params_list()
        denormed_list = self.isp.get_denormed_list(normed_list)
        new_normed = []
        for i in range(self.isp.get_params_num()):
            name = self.isp.params_name_list[i]
            constraint_info = self.isp.params_constraint_dict[name]
            lo, hi, default_value = self.isp.params_range_dict[name]
            params_type = self.isp.params_type_list[i]
            params_value = denormed_list[i]
            step = 1 if params_type is int else (hi - lo) * 0.01
            if constraint_info == "Indp":
                pass
            elif constraint_info == "Inc":
                pre = denormed_list[i - 1]
                if params_value < pre:
                    params_value = pre
            elif constraint_info == "Dec":
                pre = denormed_list[i - 1]
                if params_value > pre:
                    params_value = pre
            elif constraint_info == "StrInc":
                pre = denormed_list[i - 1]
                if params_value <= pre:
                    params_value = pre + step
            elif constraint_info == "StrDec":
                pre = denormed_list[i - 1]
                if params_value >= pre:
                    params_value = pre - step
            elif constraint_info == "Default":
                params_value = default_value
            new_normed.append(self.isp._normalize(params_value, lo, hi, 0, 1))
        normed = jnp.asarray(np.asarray(new_normed, dtype=np.float32))
        self._params_layer = build_params_layer(normed, self.img_size)
        self._means_dev = jnp.clip(normed, 0.0, 1.0)


# ----------------------------------------------------------------------------
# Main
# ----------------------------------------------------------------------------
if __name__ == "__main__":
    args = Args()
    isp = SimpleISP()

    # Deterministic in-range params derived from PRNGKey(0).
    key = jax.random.PRNGKey(0)
    p = isp.get_params_num()
    u = jax.random.uniform(key, (p,), dtype=jnp.float32)   # in [0, 1)
    u_np = np.asarray(jax.device_get(u), dtype=np.float64)
    params_list = []
    for name, uv in zip(isp.params_name_list, u_np):
        lo, hi, _ = isp.params_range_dict[name]
        params_list.append(float(lo + uv * (hi - lo)))
    ref_normed = np.clip(np.asarray(isp.get_normed_list(params_list), np.float32), 0.0, 1.0)

    # ---- 1) Module at its real size (P=4, 16x16): tiny-layer XLA bypass path.
    layer = ParamsLayer(args, isp)
    layer.set_params_layer(params_list)
    jax.block_until_ready(layer.params_layer)

    # forward() is a no-op, matching the torch module.
    x = jax.random.normal(jax.random.PRNGKey(1), (1, p, args.crop_size, args.crop_size))
    _ = layer(x)

    ref_small = np.broadcast_to(ref_normed[None, :, None, None],
                                (1, p, args.crop_size, args.crop_size))
    np.testing.assert_allclose(np.asarray(jax.device_get(layer.params_layer)),
                               ref_small, atol=1e-6)
    np.testing.assert_allclose(np.asarray(layer.get_params_list(), np.float32),
                               ref_normed, atol=1e-5)

    # External assignment invalidates the cache -> get_params_list takes the
    # Pallas reduction fallback on the small layer.
    layer.params_layer = jnp.asarray(layer.params_layer)
    np.testing.assert_allclose(np.asarray(layer.get_params_list(), np.float32),
                               ref_normed, atol=1e-5)

    # Constraint glue + rebuild.
    layer.update_params_layer()
    jax.block_until_ready(layer.params_layer)
    np.testing.assert_allclose(np.asarray(jax.device_get(layer.params_layer)),
                               ref_small, atol=1e-5)

    # ---- 2) Large img_size: exercise the Pallas fill + Pallas reduction kernels.
    big = 256
    big_layer = build_params_layer(jnp.asarray(ref_normed), big, force_pallas=True)
    jax.block_until_ready(big_layer)
    ref_big = np.broadcast_to(ref_normed[None, :, None, None], (1, p, big, big))
    np.testing.assert_allclose(np.asarray(jax.device_get(big_layer)), ref_big, atol=1e-6)

    means_big = np.asarray(jax.device_get(channel_means(big_layer)))
    jax.block_until_ready(means_big)
    np.testing.assert_allclose(means_big, ref_normed, atol=1e-5)

    print("KERNEL_OK")
</pallas_src>

<mosaic_0001>
module attributes {stable_mosaic.version = 11 : i64} {
  func.func @kernel(%arg0: i32, %arg1: memref<4x256xf32, #tpu.memory_space<vmem>>, %arg2: memref<4x128xf32, #tpu.memory_space<vmem>>) attributes {dimension_semantics = [#tpu.dimension_semantics<arbitrary>], iteration_bounds = array<i64: 1>, scalar_prefetch = 0 : i64, scratch_operands = 0 : i64, tpu.core_type = #tpu.core_type<tc>, window_params = [{transform_indices = @transform_0, window_bounds = array<i64: 4, 256>}, {pipeline_mode = #tpu.pipeline_mode<synchronous>, transform_indices = @transform_1, window_bounds = array<i64: 4, 128>}]} {
    %c0_i32 = arith.constant 0 : i32
    %0 = arith.cmpi eq, %arg0, %c0_i32 : i32
    %1 = arith.extui %0 : i1 to i32
    %c0_i32_0 = arith.constant 0 : i32
    %2 = arith.cmpi ne, %1, %c0_i32_0 : i32
    scf.if %2 {
      %cst = arith.constant 0.000000e+00 : f32
      %12 = vector.broadcast %cst : f32 to vector<4x128xf32>
      %c0_9 = arith.constant 0 : index
      %c0_10 = arith.constant 0 : index
      %13 = vector.load %arg2[%c0_9, %c0_10] : memref<4x128xf32, #tpu.memory_space<vmem>>, vector<4x128xf32>
      tpu.vector_store %arg2[%c0_9, %c0_10], %12 {strides = array<i32>} : memref<4x128xf32, #tpu.memory_space<vmem>>, vector<4x128xf32>,
    } else {
    }
    %c0 = arith.constant 0 : index
    %c0_1 = arith.constant 0 : index
    %3 = vector.load %arg1[%c0, %c0_1] : memref<4x256xf32, #tpu.memory_space<vmem>>, vector<4x128xf32>
    %c0_2 = arith.constant 0 : index
    %c128 = arith.constant 128 : index
    %4 = vector.load %arg1[%c0_2, %c128] : memref<4x256xf32, #tpu.memory_space<vmem>>, vector<4x128xf32>
    %5 = arith.addf %3, %4 : vector<4x128xf32>
    %c0_3 = arith.constant 0 : index
    %c0_4 = arith.constant 0 : index
    %6 = vector.load %arg2[%c0_3, %c0_4] : memref<4x128xf32, #tpu.memory_space<vmem>>, vector<4x128xf32>
    %7 = arith.addf %6, %5 : vector<4x128xf32>
    %c0_5 = arith.constant 0 : index
    %c0_6 = arith.constant 0 : index
    %8 = vector.load %arg2[%c0_5, %c0_6] : memref<4x128xf32, #tpu.memory_space<vmem>>, vector<4x128xf32>
    tpu.vector_store %arg2[%c0_5, %c0_6], %7 {strides = array<i32>} : memref<4x128xf32, #tpu.memory_space<vmem>>, vector<4x128xf32>,
    %c0_i32_7 = arith.constant 0 : i32
    %9 = arith.cmpi eq, %arg0, %c0_i32_7 : i32
    %10 = arith.extui %9 : i1 to i32
    %c0_i32_8 = arith.constant 0 : i32
    %11 = arith.cmpi ne, %10, %c0_i32_8 : i32
    scf.if %11 {
      %c0_9 = arith.constant 0 : index
      %c0_10 = arith.constant 0 : index
      %12 = vector.load %arg2[%c0_9, %c0_10] : memref<4x128xf32, #tpu.memory_space<vmem>>, vector<4x128xf32>
      %cst = arith.constant dense<0.000000e+00> : vector<4xf32>
      %13 = vector.multi_reduction <add>, %12, %cst [1] : vector<4x128xf32> to vector<4xf32>
      %14 = vector.shape_cast %13 : vector<4xf32> to vector<4x1xf32>
      %cst_11 = arith.constant 3.906250e-03 : f32
      %15 = vector.broadcast %cst_11 : f32 to vector<4x1xf32>
      %16 = arith.mulf %14, %15 : vector<4x1xf32>
      %17 = vector.shape_cast %16 : vector<4x1xf32> to vector<4x1xf32>
      %18 = vector.broadcast %17 : vector<4x1xf32> to vector<4x128xf32>
      %c0_12 = arith.constant 0 : index
      %c0_13 = arith.constant 0 : index
      %19 = vector.load %arg2[%c0_12, %c0_13] : memref<4x128xf32, #tpu.memory_space<vmem>>, vector<4x128xf32>
      tpu.vector_store %arg2[%c0_12, %c0_13], %18 {strides = array<i32>} : memref<4x128xf32, #tpu.memory_space<vmem>>, vector<4x128xf32>,
    } else {
    }
    return
  }
  func.func @transform_0(%arg0: i32) -> (i32, i32) {
    %c0_i32 = arith.constant 0 : i32
    %c0_i32_0 = arith.constant 0 : i32
    return %c0_i32, %arg0 : i32, i32
  }
  func.func @transform_1(%arg0: i32) -> (i32, i32) {
    %c0_i32 = arith.constant 0 : i32
    %c0_i32_0 = arith.constant 0 : i32
    %c0_i32_1 = arith.constant 0 : i32
    return %c0_i32, %c0_i32_0 : i32, i32
  }
}

</mosaic_0001>

<bundles_post_ra>
// kernel: tpu_custom_call.1
= control target key start
LH: loop header
LB: loop body
LE: loop exit
PB: predicated region body
PF: predicated region fallthrough
CT: control target
= control target key end

     0   :  { %6 = vsyncpa [#allocation3], 0  ;;  %s123_s0 = inlined_call_operand.hbm [shape: f32[4,256], index: 0, kind: input, shape index: {}]   ;;  %s124_s1 = inlined_call_operand.hbm [shape: f32[4,128], index: 1, kind: output, shape index: {}]  }
   0x1   :  { %7 = vsyncpa [#allocation4], 0  ;;  %s104_s6 = smov [#allocation2]  }
   0x2   :  { %s14_s7 = sshll.u32 %s104_s6, 4  ;;  %s15_s7 = int_to_ptr.vmem [resolvable:$true] %s14_s7 }
   0x3   :  { %s68_s8 = scalar_lea.vmem %s15_s7, 128  ;;  %p73_p1 = scmp.lt.s32.totalorder %s15_s7, %s15_s7 }
   0x4   :  { %p69_p0 = scmp.ne.s32.totalorder %s15_s7, %s68_s8  ;;  %p74_p2 = scmp.lt.s32.totalorder %s68_s8, %s68_s8 }
   0x6   :  { %p75_p3 = por %p74_p2, %p73_p1 }
   0x8   :  { %p76_p4 = pnand %p75_p3, %p69_p0 }
   0xa   :  { %79 = shalt.err (!%p76_p4)
}
   0xb   :  { %17 = dma.hbm_to_vmem [thread:$0]  %s123_s0, 128, %s15_s7, [#allocation3]  }
   0xc   :  { %100 = dma.done.wait [#allocation3], 128  }
   0xd   :  { %101 = vsyncadd [#allocation3], 4294967168  ;;  %v105_v0 = vmov 0.0   ;;  %v26_v1 = vld [vmem:[#allocation2] sm:$0xf]  ;;  %vm36_vm0 = vcmask 1043456  }
   0xe   :  { %25 = vst [vmem:[#allocation5] sm:$0xf] %v105_v0  ;;  %v27_v2 = vld [vmem:[#allocation2 + $0x4] sm:$0xf]  ;;  %s106_s11 = smov [#allocation5]  }
   0xf   :  { %v28_v3 = vadd.f32 %v27_v2, %v26_v1  ;;  %s48_s12 = sshll.u32 %s106_s11, 4  ;;  %s49_s12 = int_to_ptr.vmem [resolvable:$true] %s48_s12 }
  0x10   :  { %s80_s0 = scalar_lea.vmem %s49_s12, 64  ;;  %p85_p6 = scmp.lt.s32.totalorder %s49_s12, %s49_s12 }
  0x11   :  { %p81_p5 = scmp.ne.s32.totalorder %s49_s12, %s80_s0  ;;  %p86_p7 = scmp.lt.s32.totalorder %s80_s0, %s80_s0 }
  0x13   :  { %p87_p8 = por %p86_p7, %p85_p6 }
  0x15   :  { %v29_v4 = vld [vmem:[#allocation5] sm:$0xf]  ;;  %p88_p9 = pnand %p87_p8, %p81_p5 }
  0x16   :  { %v30_v5 = vadd.f32 %v29_v4, %v28_v3 }
  0x18   :  { %31 = vst [vmem:[#allocation5] sm:$0xf] %v30_v5 }
  0x1f   :  { %v35_v6 = vld [vmem:[#allocation5] sm:$0xf] }
  0x20   :  { %v37_v7 = vsel %vm36_vm0, %v35_v6, 0.0 }
  0x21   :  { %38 = vadd.xlane.f32.xlu0 %v37_v7 }
  0xaa   :  { %v39_v8 = vpop.xlane.xlu0 %38 }
  0xab   :  { %v40_v9 = vmul.f32 0.00390625, %v39_v8 }
  0xad   :  { %41 = vst [vmem:[#allocation5] sm:$0xf] %v40_v9 }
  0xae   :  { %91 = shalt.err (!%p88_p9)
}
  0xaf   :  { %51 = dma.vmem_to_hbm [thread:$0]  %s49_s12, 64, %s124_s1, [#allocation4]  }
  0xb0   :  { %102 = dma.done.wait [#allocation4], 64  }
  0xb1   :  { %103 = vsyncadd [#allocation4], 4294967232 }
  0xb2   :  { %55 = vsyncpa [#allocation3], 1 }
  0xb3   :  { %56 = vsyncpa [#allocation4], 1 }

</bundles_post_ra>
